<compile_context>
chip_gen: v7x
topology: tpu7x:2x2x1
jax: 0.10.0
libtpu: 0.0.40
codegen_flags: <defaults>
</compile_context>

<pallas_src>
import jax
import jax.numpy as jnp
from jax.experimental import pallas as pl
from jax.experimental.pallas import tpu as pltpu


def _flip_kernel(fg_ref, bg_ref, out_fg_ref, out_bg_ref):
    # The "new foreground" is the old background and vice versa.
    out_fg_ref[...] = bg_ref[...]
    out_bg_ref[...] = fg_ref[...]


def _pick_chunk(rows, max_rows=512):
    """Largest multiple of 8 that divides `rows` and is <= max_rows."""
    chunk = min(rows, max_rows)
    chunk -= chunk % 8
    while rows % chunk != 0:
        chunk -= 8
    return chunk


def flip_foreground_and_background(foreground_wav, background_wav):
    """Pallas implementation of FlipForegroundAndBackground.forward.

    foreground_wav, background_wav: 1-D arrays of the same length N and dtype,
    with N a multiple of 1024 (so the (N // 128, 128) view tiles on (8, 128)).
    Returns (background_wav, foreground_wav), each produced by a streamed
    Pallas copy.
    """
    n = foreground_wav.shape[0]
    assert background_wav.shape[0] == n, "fg/bg must have the same length"
    assert background_wav.dtype == foreground_wav.dtype, "fg/bg dtype mismatch"
    # TODO(synk): lengths not divisible by 1024 would need a padded tail tile.
    assert n % 128 == 0, "length must be a multiple of 128 for this layout"
    rows = n // 128
    assert rows % 8 == 0, "N//128 must be a multiple of 8 for (8,128) tiling"

    chunk = _pick_chunk(rows)          # <= 512 sublanes -> 256 KiB f32 blocks
    grid = (rows // chunk,)

    fg2d = foreground_wav.reshape(rows, 128)
    bg2d = background_wav.reshape(rows, 128)

    spec = pl.BlockSpec((chunk, 128), lambda i: (i, 0))

    out_fg2d, out_bg2d = pl.pallas_call(
        _flip_kernel,
        out_shape=(
            jax.ShapeDtypeStruct((rows, 128), background_wav.dtype),
            jax.ShapeDtypeStruct((rows, 128), foreground_wav.dtype),
        ),
        grid_spec=pltpu.PrefetchScalarGridSpec(
            num_scalar_prefetch=0,
            grid=grid,
            in_specs=[spec, spec],
            out_specs=(spec, spec),
        ),
        compiler_params=pltpu.CompilerParams(
            dimension_semantics=("parallel",),
        ),
    )(fg2d, bg2d)

    return out_fg2d.reshape(n), out_bg2d.reshape(n)


def _reference(fg, bg):
    # PyTorch module: return (background_wav, foreground_wav)
    return bg, fg


if __name__ == "__main__":
    key = jax.random.PRNGKey(0)
    k_fg, k_bg = jax.random.split(key)
    N = 2048  # small synthetic waveform length (multiple of 1024)
    foreground = jax.random.normal(k_fg, (N,), dtype=jnp.float32) * 0.3 + 0.05
    background = jax.random.normal(k_bg, (N,), dtype=jnp.float32) * 0.1 - 0.02

    new_fg, new_bg = flip_foreground_and_background(foreground, background)
    jax.block_until_ready((new_fg, new_bg))

    ref_fg, ref_bg = _reference(foreground, background)
    assert new_fg.shape == ref_fg.shape and new_bg.shape == ref_bg.shape
    assert jnp.array_equal(new_fg, ref_fg), "flipped foreground != background input"
    assert jnp.array_equal(new_bg, ref_bg), "flipped background != foreground input"

    print("KERNEL_OK")
</pallas_src>

<mosaic_0001>
module attributes {stable_mosaic.version = 11 : i64} {
  func.func @_flip_kernel(%arg0: i32, %arg1: memref<16x128xf32, #tpu.memory_space<vmem>>, %arg2: memref<16x128xf32, #tpu.memory_space<vmem>>, %arg3: memref<16x128xf32, #tpu.memory_space<vmem>>, %arg4: memref<16x128xf32, #tpu.memory_space<vmem>>) attributes {dimension_semantics = [#tpu.dimension_semantics<parallel>], iteration_bounds = array<i64: 1>, scalar_prefetch = 0 : i64, scratch_operands = 0 : i64, tpu.core_type = #tpu.core_type<tc>, window_params = [{transform_indices = @transform_0, window_bounds = array<i64: 16, 128>}, {transform_indices = @transform_1, window_bounds = array<i64: 16, 128>}, {transform_indices = @transform_2, window_bounds = array<i64: 16, 128>}, {transform_indices = @transform_3, window_bounds = array<i64: 16, 128>}]} {
    %c0 = arith.constant 0 : index
    %c0_0 = arith.constant 0 : index
    %0 = vector.load %arg2[%c0, %c0_0] : memref<16x128xf32, #tpu.memory_space<vmem>>, vector<16x128xf32>
    %c0_1 = arith.constant 0 : index
    %c0_2 = arith.constant 0 : index
    %1 = vector.load %arg3[%c0_1, %c0_2] : memref<16x128xf32, #tpu.memory_space<vmem>>, vector<16x128xf32>
    tpu.vector_store %arg3[%c0_1, %c0_2], %0 {strides = array<i32>} : memref<16x128xf32, #tpu.memory_space<vmem>>, vector<16x128xf32>,
    %c0_3 = arith.constant 0 : index
    %c0_4 = arith.constant 0 : index
    %2 = vector.load %arg1[%c0_3, %c0_4] : memref<16x128xf32, #tpu.memory_space<vmem>>, vector<16x128xf32>
    %c0_5 = arith.constant 0 : index
    %c0_6 = arith.constant 0 : index
    %3 = vector.load %arg4[%c0_5, %c0_6] : memref<16x128xf32, #tpu.memory_space<vmem>>, vector<16x128xf32>
    tpu.vector_store %arg4[%c0_5, %c0_6], %2 {strides = array<i32>} : memref<16x128xf32, #tpu.memory_space<vmem>>, vector<16x128xf32>,
    return
  }
  func.func @transform_0(%arg0: i32) -> (i32, i32) {
    %c0_i32 = arith.constant 0 : i32
    %c0_i32_0 = arith.constant 0 : i32
    return %arg0, %c0_i32 : i32, i32
  }
  func.func @transform_1(%arg0: i32) -> (i32, i32) {
    %c0_i32 = arith.constant 0 : i32
    %c0_i32_0 = arith.constant 0 : i32
    return %arg0, %c0_i32 : i32, i32
  }
  func.func @transform_2(%arg0: i32) -> (i32, i32) {
    %c0_i32 = arith.constant 0 : i32
    %c0_i32_0 = arith.constant 0 : i32
    return %arg0, %c0_i32 : i32, i32
  }
  func.func @transform_3(%arg0: i32) -> (i32, i32) {
    %c0_i32 = arith.constant 0 : i32
    %c0_i32_0 = arith.constant 0 : i32
    return %arg0, %c0_i32 : i32, i32
  }
}

</mosaic_0001>

<bundles_post_ra>
// kernel: tpu_custom_call.1
= control target key start
LH: loop header
LB: loop body
LE: loop exit
PB: predicated region body
PF: predicated region fallthrough
CT: control target
= control target key end

     0   :  { %9 = vsyncpa [#allocation3], 0  ;;  %s280_s0 = inlined_call_operand.hbm [shape: f32[16,128], index: 0, kind: input, shape index: {}]   ;;  %s281_s1 = inlined_call_operand.hbm [shape: f32[16,128], index: 1, kind: input, shape index: {}]   ;;  %s282_s2 = inlined_call_operand.hbm [shape: f32[16,128], index: 2, kind: output, shape index: {0}]   ;;  %s283_s3 = inlined_call_operand.hbm [shape: f32[16,128], index: 3, kind: output, shape index: {1}]  }
   0x1   :  { %10 = vsyncpa [#allocation6], 0 }
   0x2   :  { %11 = vsyncpa [#allocation4], 0 }
   0x3   :  { %12 = vsyncpa [#allocation9], 0  ;;  %s187_s12 = smov [#allocation2]   ;;  %s91_s16 = scalar_lea.hbm %s280_s0, 256 }
   0x4   :  { %s18_s13 = sshll.u32 %s187_s12, 4  ;;  %p92_p0 = scmp.ne.s32.totalorder %s280_s0, %s91_s16  ;;  %s19_s13 = int_to_ptr.vmem [resolvable:$true] %s18_s13 }
   0x5   :  { %p95_p1 = scmp.lt.u32.totalorder %s91_s16, %s280_s0 }
   0x7   :  { %p97_p2 = pnand %p95_p1, %p92_p0 }
   0x9   :  { %100 = shalt.err (!%p97_p2)
}
   0xa   :  { %s101_s21 = scalar_lea.vmem %s19_s13, 256  ;;  %p106_p4 = scmp.lt.s32.totalorder %s19_s13, %s19_s13 }
   0xb   :  { %p102_p3 = scmp.ne.s32.totalorder %s19_s13, %s101_s21  ;;  %p107_p5 = scmp.lt.s32.totalorder %s101_s21, %s101_s21 }
   0xd   :  { %p108_p6 = por %p107_p5, %p106_p4 }
   0xf   :  { %p109_p7 = pnand %p108_p6, %p102_p3 }
  0x11   :  { %112 = shalt.err (!%p109_p7)
}
  0x12   :  { %s188_s22 = smov 128   ;;  %s189_s23 = smov 8  }
  0x13   :  { %24 = dma.hbm_to_vmem [thread:$0]  %s280_s0, 256, %s19_s13, [#allocation3], %s188_s22, %s188_s22, %s189_s23  }
  0x14   :  { %s190_s26 = smov [#allocation5]   ;;  %s113_s30 = scalar_lea.hbm %s281_s1, 256 }
  0x15   :  { %s30_s27 = sshll.u32 %s190_s26, 4  ;;  %p114_p8 = scmp.ne.s32.totalorder %s281_s1, %s113_s30  ;;  %s31_s27 = int_to_ptr.vmem [resolvable:$true] %s30_s27 }
  0x16   :  { %p117_p9 = scmp.lt.u32.totalorder %s113_s30, %s281_s1 }
  0x18   :  { %p119_p10 = pnand %p117_p9, %p114_p8 }
  0x1a   :  { %122 = shalt.err (!%p119_p10)
}
  0x1b   :  { %s123_s8 = scalar_lea.vmem %s31_s27, 256  ;;  %p128_p12 = scmp.lt.s32.totalorder %s31_s27, %s31_s27 }
  0x1c   :  { %p124_p11 = scmp.ne.s32.totalorder %s31_s27, %s123_s8  ;;  %p129_p13 = scmp.lt.s32.totalorder %s123_s8, %s123_s8 }
  0x1e   :  { %p130_p0 = por %p129_p13, %p128_p12 }
  0x20   :  { %p131_p1 = pnand %p130_p0, %p124_p11 }
  0x22   :  { %134 = shalt.err (!%p131_p1)
}
  0x23   :  { %36 = dma.hbm_to_vmem [thread:$0]  %s281_s1, 256, %s31_s27, [#allocation6], %s188_s22, %s188_s22, %s189_s23  }
  0x24   :  { %179 = dma.done.wait [#allocation3], 256  }
  0x25   :  { %180 = vsyncadd [#allocation3], 4294967040 }
  0x26   :  { %181 = dma.done.wait [#allocation6], 256  }
  0x27   :  { %182 = vsyncadd [#allocation6], 4294967040  ;;  %s191_s10 = smov [#allocation7]   ;;  %s192_s12 = smov [#allocation8]   ;;  %v43_v0 = vld [vmem:[#allocation5] sm:$0xff]  ;;  %v44_v1 = vld [vmem:[#allocation5 + $0x8] sm:$0xff] }
  0x28   :  { %s56_s11 = sshll.u32 %s191_s10, 4  ;;  %s68_s13 = sshll.u32 %s192_s12, 4  ;;  %v47_v2 = vld [vmem:[#allocation2] sm:$0xff]  ;;  %45 = vst [vmem:[#allocation7] sm:$0xff] %v43_v0  ;;  %46 = vst [vmem:[#allocation7 + $0x8] sm:$0xff] %v44_v1  ;;  %v48_v3 = vld [vmem:[#allocation2 + $0x8] sm:$0xff]  ;;  %s57_s11 = int_to_ptr.vmem [resolvable:$true] %s56_s11  ;;  %s243_s13 = int_to_ptr.vmem [resolvable:$true] %s68_s13 }
  0x29   :  { %49 = vst [vmem:[#allocation8] sm:$0xff] %v47_v2  ;;  %50 = vst [vmem:[#allocation8 + $0x8] sm:$0xff] %v48_v3  ;;  %s135_s1 = scalar_lea.vmem %s57_s11, 256  ;;  %p140_p3 = scmp.lt.s32.totalorder %s57_s11, %s57_s11 }
  0x2a   :  { %p136_p2 = scmp.ne.s32.totalorder %s57_s11, %s135_s1  ;;  %p141_p4 = scmp.lt.s32.totalorder %s135_s1, %s135_s1 }
  0x2c   :  { %p142_p5 = por %p141_p4, %p140_p3 }
  0x2e   :  { %p143_p6 = pnand %p142_p5, %p136_p2 }
  0x30   :  { %146 = shalt.err (!%p143_p6)
}
  0x31   :  { %s147_s16 = scalar_lea.hbm %s282_s2, 256 }
  0x32   :  { %p148_p7 = scmp.ne.s32.totalorder %s282_s2, %s147_s16  ;;  %p151_p8 = scmp.lt.u32.totalorder %s147_s16, %s282_s2 }
  0x34   :  { %p153_p9 = pnand %p151_p8, %p148_p7 }
  0x36   :  { %156 = shalt.err (!%p153_p9)
}
  0x37   :  { %62 = dma.vmem_to_hbm [thread:$0]  %s57_s11, 256, %s282_s2, [#allocation4], %s188_s22, %s188_s22, %s189_s23  }
  0x38   :  { %s157_s25 = scalar_lea.vmem %s243_s13, 256  ;;  %p162_p11 = scmp.lt.s32.totalorder %s243_s13, %s243_s13 }
  0x39   :  { %p158_p10 = scmp.ne.s32.totalorder %s243_s13, %s157_s25  ;;  %p163_p12 = scmp.lt.s32.totalorder %s157_s25, %s157_s25 }
  0x3b   :  { %p164_p13 = por %p163_p12, %p162_p11 }
  0x3d   :  { %p165_p0 = pnand %p164_p13, %p158_p10 }
  0x3f   :  { %168 = shalt.err (!%p165_p0)
}
  0x40   :  { %s169_s28 = scalar_lea.hbm %s283_s3, 256 }
  0x41   :  { %p170_p1 = scmp.ne.s32.totalorder %s283_s3, %s169_s28  ;;  %p173_p2 = scmp.lt.u32.totalorder %s169_s28, %s283_s3 }
  0x43   :  { %p175_p3 = pnand %p173_p2, %p170_p1 }
  0x45   :  { %178 = shalt.err (!%p175_p3)
}
  0x46   :  { %74 = dma.vmem_to_hbm [thread:$0]  %s243_s13, 256, %s283_s3, [#allocation9], %s188_s22, %s188_s22, %s189_s23  }
  0x47   :  { %183 = dma.done.wait [#allocation4], 256  }
  0x48   :  { %184 = vsyncadd [#allocation4], 4294967040 }
  0x49   :  { %185 = dma.done.wait [#allocation9], 256  }
  0x4a   :  { %186 = vsyncadd [#allocation9], 4294967040 }
  0x4b   :  { %81 = vsyncpa [#allocation3], 1 }
  0x4c   :  { %82 = vsyncpa [#allocation6], 1 }
  0x4d   :  { %83 = vsyncpa [#allocation4], 1 }
  0x4e   :  { %84 = vsyncpa [#allocation9], 1 }

</bundles_post_ra>
